<compile_context>
chip_gen: v7x
topology: tpu7x:2x2x1
jax: 0.10.0
libtpu: 0.0.40
codegen_flags: <defaults>
</compile_context>

<pallas_src>
import jax
import jax.numpy as jnp
from jax.experimental import pallas as pl
from jax.experimental.pallas import tpu as pltpu


_LANE_COLS = 1024                 # preferred lane-dense slab width
_TARGET_BLOCK_BYTES = 4 << 20     # ~4 MiB per buffer (in input dtype)


def _mish_kernel(x_ref, o_ref):
    x = x_ref[...]
    xf = x.astype(jnp.float32)
    # mish(x) = x * tanh(softplus(x))
    #         = x * (e^{2x} + 2 e^x) / (e^{2x} + 2 e^x + 2)
    # Clamp the exp argument: for x > 20 the ratio is 1.0 to f32 precision, so
    # clamping changes nothing while preventing e^{2x} overflow (also guards
    # any garbage values living in the masked tail of a partial last block).
    xc = jnp.minimum(xf, 20.0)
    ex = jnp.exp(xc)                       # single EUP transcendental
    n = ex * (ex + 2.0)                    # e^{2x} + 2 e^x
    d = n + 2.0
    r = pl.reciprocal(d, approx=True)      # EUP vrcp (separate slot, near-free)
    if jnp.dtype(o_ref.dtype).itemsize >= 4:
        # One Newton refinement: ~f32 accuracy. Skipped for bf16/fp16 outputs,
        # where the approximate reciprocal already exceeds output precision.
        r = r * (2.0 - d * r)
    o_ref[...] = (xf * n * r).astype(o_ref.dtype)


def mish(x):
    """Mish activation (x * tanh(softplus(x))) via a Pallas TPU kernel."""
    orig_shape = x.shape
    total = int(x.size)
    if total == 0:
        return x
    itemsize = jnp.dtype(x.dtype).itemsize

    # Pick a lane width that divides the total so flatten is copy-only (no pad
    # / no output slice). Falls back to padding only for total % 128 != 0.
    cols = None
    for c in (_LANE_COLS, 512, 256, 128):
        if total % c == 0:
            cols = c
            break

    pad = 0
    if cols is not None:
        x2d = x.reshape(total // cols, cols)
    else:
        cols = _LANE_COLS
        pad = (-total) % cols                          # <= 1023 elements
        x2d = jnp.pad(x.reshape(-1), (0, pad)).reshape(-1, cols)

    rows = x2d.shape[0]

    # Sublane granularity: 16 rows for sub-32-bit dtypes (packed vregs), 8 for 32-bit.
    sub = 16 if itemsize < 4 else 8
    target_r = max(sub, _TARGET_BLOCK_BYTES // (cols * itemsize))
    target_r = max(sub, (target_r // sub) * sub)
    if rows <= target_r:
        tile_r = rows                                  # block == full row extent
    else:
        tile_r = target_r                              # last block partial -> masked

    grid = (pl.cdiv(rows, tile_r),)
    spec = pl.BlockSpec((tile_r, cols), lambda i: (i, 0))

    n_ops = 11 if itemsize >= 4 else 8                 # VALU ops / element
    y2d = pl.pallas_call(
        _mish_kernel,
        out_shape=jax.ShapeDtypeStruct((rows, cols), x.dtype),
        grid_spec=pltpu.PrefetchScalarGridSpec(
            num_scalar_prefetch=0,
            grid=grid,
            in_specs=[spec],
            out_specs=spec,
        ),
        compiler_params=pltpu.CompilerParams(
            dimension_semantics=("parallel",),          # v7x: shard across 2 TCs
            vmem_limit_bytes=32 * 1024 * 1024,          # ~16 MiB live at 4 MiB tiles
        ),
        cost_estimate=pl.CostEstimate(
            flops=n_ops * total,
            transcendentals=2 * total,                  # exp + approx reciprocal
            bytes_accessed=2 * total * itemsize,
        ),
    )(x2d)

    y_flat = y2d.reshape(-1)
    if pad:
        y_flat = y_flat[:total]
    return y_flat.reshape(orig_shape)


def _mish_ref(x):
    xf = x.astype(jnp.float32)
    return (xf * jnp.tanh(jax.nn.softplus(xf))).astype(x.dtype)


if __name__ == "__main__":
    key = jax.random.PRNGKey(0)

    # Small NCHW shape consistent with the module's usage (fast path: no pad).
    x = jax.random.normal(key, (2, 4, 16, 16), dtype=jnp.float32)
    y = mish(x)
    jax.block_until_ready(y)
    y_ref = _mish_ref(x)
    assert y.shape == x.shape and y.dtype == x.dtype
    assert jnp.allclose(y, y_ref, atol=1e-4, rtol=1e-4), float(
        jnp.max(jnp.abs(y - y_ref))
    )

    # Odd / non-128-aligned size exercises the pad fallback path.
    x2 = 5.0 * jax.random.normal(jax.random.PRNGKey(1), (3, 5, 7, 7), dtype=jnp.float32)
    y2 = mish(x2)
    jax.block_until_ready(y2)
    y2_ref = _mish_ref(x2)
    assert y2.shape == x2.shape
    assert jnp.allclose(y2, y2_ref, atol=1e-4, rtol=1e-4), float(
        jnp.max(jnp.abs(y2 - y2_ref))
    )

    # bf16 exercises the trimmed (no-Newton) path and sub-32-bit tiling.
    x3 = jax.random.normal(jax.random.PRNGKey(2), (2, 8, 8, 16), dtype=jnp.bfloat16)
    y3 = mish(x3)
    jax.block_until_ready(y3)
    y3_ref = _mish_ref(x3)
    assert y3.shape == x3.shape and y3.dtype == x3.dtype
    assert jnp.allclose(
        y3.astype(jnp.float32), y3_ref.astype(jnp.float32), atol=2e-2, rtol=2e-2
    ), float(jnp.max(jnp.abs(y3.astype(jnp.float32) - y3_ref.astype(jnp.float32))))

    print("KERNEL_OK")
</pallas_src>

<mosaic_0001>
module attributes {stable_mosaic.version = 11 : i64} {
  func.func @_mish_kernel(%arg0: i32, %arg1: memref<2x1024xf32, #tpu.memory_space<vmem>>, %arg2: memref<2x1024xf32, #tpu.memory_space<vmem>>) attributes {dimension_semantics = [#tpu.dimension_semantics<parallel>], iteration_bounds = array<i64: 1>, scalar_prefetch = 0 : i64, scratch_operands = 0 : i64, tpu.core_type = #tpu.core_type<tc>, window_params = [{transform_indices = @transform_0, window_bounds = array<i64: 2, 1024>}, {transform_indices = @transform_1, window_bounds = array<i64: 2, 1024>}]} {
    %c0 = arith.constant 0 : index
    %c0_0 = arith.constant 0 : index
    %0 = vector.load %arg1[%c0, %c0_0] : memref<2x1024xf32, #tpu.memory_space<vmem>>, vector<2x1024xf32>
    %cst = arith.constant 2.000000e+01 : f32
    %1 = vector.broadcast %cst : f32 to vector<2x1024xf32>
    %2 = arith.minimumf %0, %1 : vector<2x1024xf32>
    %3 = math.exp %2 : vector<2x1024xf32>
    %cst_1 = arith.constant 2.000000e+00 : f32
    %4 = vector.broadcast %cst_1 : f32 to vector<2x1024xf32>
    %5 = arith.addf %3, %4 : vector<2x1024xf32>
    %6 = arith.mulf %3, %5 : vector<2x1024xf32>
    %cst_2 = arith.constant 2.000000e+00 : f32
    %7 = vector.broadcast %cst_2 : f32 to vector<2x1024xf32>
    %8 = arith.addf %6, %7 : vector<2x1024xf32>
    %9 = tpu.reciprocal %8 {approx = true} : vector<2x1024xf32> -> vector<2x1024xf32>
    %10 = arith.mulf %8, %9 : vector<2x1024xf32>
    %cst_3 = arith.constant 2.000000e+00 : f32
    %11 = vector.broadcast %cst_3 : f32 to vector<2x1024xf32>
    %12 = arith.subf %11, %10 : vector<2x1024xf32>
    %13 = arith.mulf %9, %12 : vector<2x1024xf32>
    %14 = arith.mulf %0, %6 : vector<2x1024xf32>
    %15 = arith.mulf %14, %13 : vector<2x1024xf32>
    %c0_4 = arith.constant 0 : index
    %c0_5 = arith.constant 0 : index
    %16 = vector.load %arg2[%c0_4, %c0_5] : memref<2x1024xf32, #tpu.memory_space<vmem>>, vector<2x1024xf32>
    tpu.vector_store %arg2[%c0_4, %c0_5], %15 {strides = array<i32>} : memref<2x1024xf32, #tpu.memory_space<vmem>>, vector<2x1024xf32>,
    return
  }
  func.func @transform_0(%arg0: i32) -> (i32, i32) {
    %c0_i32 = arith.constant 0 : i32
    %c0_i32_0 = arith.constant 0 : i32
    return %arg0, %c0_i32 : i32, i32
  }
  func.func @transform_1(%arg0: i32) -> (i32, i32) {
    %c0_i32 = arith.constant 0 : i32
    %c0_i32_0 = arith.constant 0 : i32
    return %arg0, %c0_i32 : i32, i32
  }
}

</mosaic_0001>

<bundles_post_ra>
// kernel: tpu_custom_call.1
= control target key start
LH: loop header
LB: loop body
LE: loop exit
PB: predicated region body
PF: predicated region fallthrough
CT: control target
= control target key end

     0   :  { %6 = vsyncpa [#allocation3], 0  ;;  %s158_s0 = inlined_call_operand.hbm [shape: f32[2,1024], index: 0, kind: input, shape index: {}]   ;;  %s159_s1 = inlined_call_operand.hbm [shape: f32[2,1024], index: 1, kind: output, shape index: {}]  }
   0x1   :  { %7 = vsyncpa [#allocation4], 0  ;;  %s122_s6 = smov [#allocation2]   ;;  %s74_s10 = scalar_lea.hbm %s158_s0, 256 }
   0x2   :  { %s14_s7 = sshll.u32 %s122_s6, 4  ;;  %p75_p0 = scmp.ne.s32.totalorder %s158_s0, %s74_s10  ;;  %s15_s7 = int_to_ptr.vmem [resolvable:$true] %s14_s7 }
   0x3   :  { %p78_p1 = scmp.lt.u32.totalorder %s74_s10, %s158_s0 }
   0x5   :  { %p80_p2 = pnand %p78_p1, %p75_p0 }
   0x7   :  { %83 = shalt.err (!%p80_p2)
}
   0x8   :  { %s84_s15 = scalar_lea.vmem %s15_s7, 256  ;;  %p89_p4 = scmp.lt.s32.totalorder %s15_s7, %s15_s7 }
   0x9   :  { %p85_p3 = scmp.ne.s32.totalorder %s15_s7, %s84_s15  ;;  %p90_p5 = scmp.lt.s32.totalorder %s84_s15, %s84_s15 }
   0xb   :  { %p91_p6 = por %p90_p5, %p89_p4 }
   0xd   :  { %p92_p7 = pnand %p91_p6, %p85_p3 }
   0xf   :  { %95 = shalt.err (!%p92_p7)
}
  0x10   :  { %17 = dma.hbm_to_vmem [thread:$0]  %s158_s0, 256, %s15_s7, [#allocation3]  }
  0x11   :  { %118 = dma.done.wait [#allocation3], 256  }
  0x12   :  { %119 = vsyncadd [#allocation3], 4294967040  ;;  %v21_v0 = vld [vmem:[#allocation2] sm:$0xff]  ;;  %v22_v1 = vld [vmem:[#allocation2 + $0x8] sm:$0xff]  ;;  %s123_s0 = smov [#allocation5]  }
  0x13   :  { %v23_v2 = vmin.f32 %v21_v0, 20.0  ;;  %v24_v3 = vmin.f32 %v22_v1, 20.0  ;;  %s55_s18 = sshll.u32 %s123_s0, 4  ;;  %s56_s18 = int_to_ptr.vmem [resolvable:$true] %s55_s18 }
  0x14   :  { %s96_s19 = scalar_lea.vmem %s56_s18, 256  ;;  %p101_p9 = scmp.lt.s32.totalorder %s56_s18, %s56_s18 }
  0x15   :  { %v25_v4 = vmul.f32 1.442695, %v23_v2  ;;  %v27_v5 = vmul.f32 1.442695, %v24_v3  ;;  %p97_p8 = scmp.ne.s32.totalorder %s56_s18, %s96_s19  ;;  %p102_p10 = scmp.lt.s32.totalorder %s96_s19, %s96_s19 }
  0x17   :  { %66 = vpow2.f32 %v25_v4  ;;  %p103_p11 = por %p102_p10, %p101_p9 }
  0x18   :  { %68 = vpow2.f32 %v27_v5 }
  0x19   :  { %p104_p12 = pnand %p103_p11, %p97_p8 }
  0x21   :  { %v67_v6 = vpop.eup %66 }
  0x22   :  { %v69_v7 = vpop.eup %68  ;;  %v29_v8 = vadd.f32 2.0, %v67_v6 }
  0x23   :  { %v30_v9 = vadd.f32 2.0, %v69_v7 }
  0x24   :  { %v31_v10 = vmul.f32 %v67_v6, %v29_v8 }
  0x25   :  { %v32_v11 = vmul.f32 %v69_v7, %v30_v9 }
  0x26   :  { %v33_v12 = vadd.f32 2.0, %v31_v10  ;;  %v43_v19 = vmul.f32 %v31_v10, %v21_v0 }
  0x27   :  { %v34_v13 = vadd.f32 2.0, %v32_v11  ;;  %v44_v21 = vmul.f32 %v32_v11, %v22_v1 }
  0x28   :  { %70 = vrcp.f32 %v33_v12 }
  0x29   :  { %72 = vrcp.f32 %v34_v13 }
  0x32   :  { %v71_v14 = vpop.eup %70 }
  0x33   :  { %v73_v15 = vpop.eup %72  ;;  %v37_v16 = vmul.f32 %v71_v14, %v33_v12 }
  0x34   :  { %v38_v17 = vmul.f32 %v73_v15, %v34_v13 }
  0x35   :  { %v39_v18 = vsub.f32 2.0, %v37_v16 }
  0x36   :  { %v40_v20 = vsub.f32 2.0, %v38_v17 }
  0x37   :  { %v41_v22 = vmul.f32 %v71_v14, %v39_v18 }
  0x38   :  { %v42_v23 = vmul.f32 %v73_v15, %v40_v20 }
  0x39   :  { %v45_v24 = vmul.f32 %v43_v19, %v41_v22 }
  0x3a   :  { %v46_v25 = vmul.f32 %v44_v21, %v42_v23 }
  0x3b   :  { %47 = vst [vmem:[#allocation5] sm:$0xff] %v45_v24 }
  0x3c   :  { %48 = vst [vmem:[#allocation5 + $0x8] sm:$0xff] %v46_v25 }
  0x3d   :  { %107 = shalt.err (!%p104_p12)
}
  0x3e   :  { %s108_s22 = scalar_lea.hbm %s159_s1, 256 }
  0x3f   :  { %p109_p13 = scmp.ne.s32.totalorder %s159_s1, %s108_s22  ;;  %p112_p0 = scmp.lt.u32.totalorder %s108_s22, %s159_s1 }
  0x41   :  { %p114_p1 = pnand %p112_p0, %p109_p13 }
  0x43   :  { %117 = shalt.err (!%p114_p1)
}
  0x44   :  { %58 = dma.vmem_to_hbm [thread:$0]  %s56_s18, 256, %s159_s1, [#allocation4]  }
  0x45   :  { %120 = dma.done.wait [#allocation4], 256  }
  0x46   :  { %121 = vsyncadd [#allocation4], 4294967040 }
  0x47   :  { %62 = vsyncpa [#allocation3], 1 }
  0x48   :  { %63 = vsyncpa [#allocation4], 1 }

</bundles_post_ra>
